<compile_context>
chip_gen: v5e
topology: v5e:2x2
jax: 0.10.0
libtpu: 0.0.40
codegen_flags: <defaults>
</compile_context>

<pallas_src>
import jax
import jax.numpy as jnp
from jax.experimental import pallas as pl
from jax.experimental.pallas import tpu as pltpu

LANE = 128            # batch goes on the lane axis
MAX_TILE_ROWS = 2048  # (2048, 128) f32 tile = 1 MiB per buffer; ~10 MiB live double-buffered
ROW_ALIGN = 8         # sublane granularity for multi-tile block shapes


def _ceil_div(a, b):
    return -(-a // b)


def _round_up(a, b):
    return _ceil_div(a, b) * b


def _choose_tiling(rows):
    """Balanced tiles, multiple of 8 rows, >= 2 (even) tiles for v7x megacore."""
    if rows <= ROW_ALIGN:
        return rows, 1                      # single block == full dim (exempt from /8 rule)
    num_tiles = max(2, _ceil_div(rows, MAX_TILE_ROWS))
    num_tiles = _round_up(num_tiles, 2)     # even -> balanced across 2 TCs on v7x
    tile_rows = min(MAX_TILE_ROWS, _round_up(_ceil_div(rows, num_tiles), ROW_ALIGN))
    num_tiles = _ceil_div(rows, tile_rows)  # Pallas handles a ragged last block
    return tile_rows, num_tiles


def self_attn_kernel(params_ref, x1_ref, x2_ref, out_ref, attn_ref):
    # x*_ref: (tile_rows, LANE) f32, one batch element per lane (and sublane row).
    p0 = x1_ref[...]                        # sequence position 0 values
    p1 = x2_ref[...]                        # sequence position 1 values

    Wq, Wk, Wv = params_ref[0], params_ref[1], params_ref[2]
    bq, bv = params_ref[3], params_ref[5]
    Wo, bo = params_ref[6], params_ref[7]
    fw0, fw1, fb = params_ref[8], params_ref[9], params_ref[10]

    # Derived scalars (computed once, scalar unit): fold out-projection into fc2.
    c0 = fw0 * Wo
    c1 = fw1 * Wo
    cs = c0 + c1
    cb = (fw0 + fw1) * bo + fb

    # in-projections (embed_dim = 1 -> scalar weights); scale = 1/sqrt(1) = 1.
    # bk cancels in dk = k1 - k0, bv cancels in dv = v1 - v0.
    d = p1 - p0
    dk = Wk * d
    dv = Wv * d
    q0 = Wq * p0 + bq
    q1 = Wq * p1 + bq
    v0 = Wv * p0 + bv

    # 2-way softmax via sigmoid identity (exact):
    #   w01 = softmax([q0*k0, q0*k1])[1] = sigmoid(q0*(k1-k0))
    #   w11 = softmax([q1*k0, q1*k1])[1] = sigmoid(q1*(k1-k0))
    w01 = jax.nn.sigmoid(q0 * dk)
    w11 = jax.nn.sigmoid(q1 * dk)

    # attn out a_i = v0 + w_i1*dv; fc2(out_proj(.)) + sigmoid with Wo/bo folded:
    #   fw0*(Wo*a0+bo) + fw1*(Wo*a1+bo) + fb = cs*v0 + (c0*w01 + c1*w11)*dv + cb
    out_ref[...] = jax.nn.sigmoid(cs * v0 + (c0 * w01 + c1 * w11) * dv + cb)

    # attention weights, packed as one output stream: [0] = w[0,1], [1] = w[1,1]
    attn_ref[0] = w01
    attn_ref[1] = w11


def self_attention_2d_points(x1, x2, params):
    """x1, x2: (B, 1) float32.

    Returns (output (B, 1), attn_weights (2, B)) where attn_weights[0] = w[0,1]
    and attn_weights[1] = w[1,1] per batch element.  The (B, 2) interleave is
    left to the consumer to avoid an extra HBM pass.  When B % 128 == 0 the
    wrapper is zero-copy (reshapes only).
    """
    x1f = jnp.ravel(x1).astype(jnp.float32)
    x2f = jnp.ravel(x2).astype(jnp.float32)
    B = x1f.shape[0]

    rows = _ceil_div(B, LANE)
    total = rows * LANE
    padded = total != B
    if padded:                               # only for ragged B (pad < 128 elements)
        x1f = jnp.pad(x1f, (0, total - B))
        x2f = jnp.pad(x2f, (0, total - B))
    x1p = x1f.reshape(rows, LANE)            # free reshape when B % 128 == 0
    x2p = x2f.reshape(rows, LANE)

    tile_rows, num_tiles = _choose_tiling(rows)

    x_spec = pl.BlockSpec((tile_rows, LANE), lambda i, prm: (i, 0))
    out_spec = pl.BlockSpec((tile_rows, LANE), lambda i, prm: (i, 0))
    attn_spec = pl.BlockSpec((2, tile_rows, LANE), lambda i, prm: (0, i, 0))

    out2d, attn3d = pl.pallas_call(
        self_attn_kernel,
        out_shape=(
            jax.ShapeDtypeStruct((rows, LANE), jnp.float32),
            jax.ShapeDtypeStruct((2, rows, LANE), jnp.float32),
        ),
        grid_spec=pltpu.PrefetchScalarGridSpec(
            num_scalar_prefetch=1,           # params -> SMEM
            grid=(num_tiles,),
            in_specs=[x_spec, x_spec],
            out_specs=(out_spec, attn_spec),
        ),
        compiler_params=pltpu.CompilerParams(
            dimension_semantics=("parallel",),   # shards grid across 2 TCs on v7x
            vmem_limit_bytes=32 << 20,           # headroom for 1 MiB tiles, safe on all gens
        ),
        cost_estimate=pl.CostEstimate(
            flops=20 * total,
            transcendentals=3 * total,
            bytes_accessed=20 * total,           # read 2 f32, write 3 f32 per element
        ),
    )(params.astype(jnp.float32), x1p, x2p)

    if padded:
        output = out2d.reshape(-1)[:B].reshape(B, 1)
        attn = attn3d.reshape(2, -1)[:, :B]
    else:
        output = out2d.reshape(B, 1)             # free reshapes (no copy)
        attn = attn3d.reshape(2, B)
    return output, attn


def ref_forward(x1, x2, params):
    """Pure-JAX reference (mirrors nn.MultiheadAttention, embed_dim=1, 1 head)."""
    Wq, Wk, Wv, bq, bk, bv, Wo, bo, fw0, fw1, fb = [params[i] for i in range(11)]
    x = jnp.concatenate([x1, x2], axis=-1)           # (B, 2)
    q = Wq * x + bq
    k = Wk * x + bk
    v = Wv * x + bv
    s = q[:, :, None] * k[:, None, :]                # (B, 2, 2), scale = 1/sqrt(1)
    w = jax.nn.softmax(s, axis=-1)
    a = jnp.einsum("bij,bj->bi", w, v)               # (B, 2)
    o = Wo * a + bo
    y = jax.nn.sigmoid(fw0 * o[:, 0:1] + fw1 * o[:, 1:2] + fb)
    attn = jnp.stack([w[:, 0, 1], w[:, 1, 1]], axis=-1)
    return y, attn


if __name__ == "__main__":
    key = jax.random.PRNGKey(0)
    k_p, k_b1, k_b2 = jax.random.split(key, 3)

    # Synthetic parameters (module __init__ shapes, embed_dim=1):
    #   MultiheadAttention: in_proj_weight (3,1), in_proj_bias (3,), out_proj (1,1)+(1,)
    #   fc2: Linear(2, 1) -> weight (1,2), bias (1,)
    params = (jax.random.normal(k_p, (11,), dtype=jnp.float32) * 0.5)

    # Spec's example points (B=3): exercises the padded, single-tile path.
    x1 = jnp.array([[1.0], [2.0], [3.0]], dtype=jnp.float32)
    x2 = jnp.array([[2.0], [1.5], [1.0]], dtype=jnp.float32)
    out, attn = self_attention_2d_points(x1, x2, params)
    out = jax.block_until_ready(out)
    attn = jax.block_until_ready(attn)
    ref_out, ref_attn = ref_forward(x1, x2, params)
    assert out.shape == (3, 1) and attn.shape == (2, 3)
    assert jnp.allclose(out, ref_out, atol=1e-5, rtol=1e-5)
    assert jnp.allclose(attn.T, ref_attn, atol=1e-5, rtol=1e-5)

    # Larger batch, B % 128 == 0: zero-copy wrapper path + multi-tile grid.
    B = 4096
    xb1 = jax.random.normal(k_b1, (B, 1), dtype=jnp.float32)
    xb2 = jax.random.normal(k_b2, (B, 1), dtype=jnp.float32)
    out_b, attn_b = self_attention_2d_points(xb1, xb2, params)
    out_b = jax.block_until_ready(out_b)
    attn_b = jax.block_until_ready(attn_b)
    ref_out_b, ref_attn_b = ref_forward(xb1, xb2, params)
    assert out_b.shape == (B, 1) and attn_b.shape == (2, B)
    assert jnp.allclose(out_b, ref_out_b, atol=1e-5, rtol=1e-5)
    assert jnp.allclose(attn_b.T, ref_attn_b, atol=1e-5, rtol=1e-5)

    print("KERNEL_OK")
</pallas_src>

<mosaic_0001>
module attributes {stable_mosaic.version = 11 : i64} {
  func.func @self_attn_kernel(%arg0: i32, %arg1: memref<11xf32, #tpu.memory_space<smem>>, %arg2: memref<1x128xf32, #tpu.memory_space<vmem>>, %arg3: memref<1x128xf32, #tpu.memory_space<vmem>>, %arg4: memref<1x128xf32, #tpu.memory_space<vmem>>, %arg5: memref<2x1x128xf32, #tpu.memory_space<vmem>>) attributes {dimension_semantics = [#tpu.dimension_semantics<parallel>], iteration_bounds = array<i64: 1>, scalar_prefetch = 1 : i64, scratch_operands = 0 : i64, tpu.core_type = #tpu.core_type<tc>, window_params = [{transform_indices = @transform_0, window_bounds = array<i64: 1, 128>}, {transform_indices = @transform_1, window_bounds = array<i64: 1, 128>}, {transform_indices = @transform_2, window_bounds = array<i64: 1, 128>}, {transform_indices = @transform_3, window_bounds = array<i64: 2, 1, 128>}]} {
    %c0 = arith.constant 0 : index
    %c0_0 = arith.constant 0 : index
    %0 = vector.load %arg2[%c0, %c0_0] : memref<1x128xf32, #tpu.memory_space<vmem>>, vector<1x128xf32>
    %c0_1 = arith.constant 0 : index
    %c0_2 = arith.constant 0 : index
    %1 = vector.load %arg3[%c0_1, %c0_2] : memref<1x128xf32, #tpu.memory_space<vmem>>, vector<1x128xf32>
    %c0_3 = arith.constant 0 : index
    %2 = memref.load %arg1[%c0_3] : memref<11xf32, #tpu.memory_space<smem>>
    %c1 = arith.constant 1 : index
    %3 = memref.load %arg1[%c1] : memref<11xf32, #tpu.memory_space<smem>>
    %c2 = arith.constant 2 : index
    %4 = memref.load %arg1[%c2] : memref<11xf32, #tpu.memory_space<smem>>
    %c3 = arith.constant 3 : index
    %5 = memref.load %arg1[%c3] : memref<11xf32, #tpu.memory_space<smem>>
    %c5 = arith.constant 5 : index
    %6 = memref.load %arg1[%c5] : memref<11xf32, #tpu.memory_space<smem>>
    %c6 = arith.constant 6 : index
    %7 = memref.load %arg1[%c6] : memref<11xf32, #tpu.memory_space<smem>>
    %c7 = arith.constant 7 : index
    %8 = memref.load %arg1[%c7] : memref<11xf32, #tpu.memory_space<smem>>
    %c8 = arith.constant 8 : index
    %9 = memref.load %arg1[%c8] : memref<11xf32, #tpu.memory_space<smem>>
    %c9 = arith.constant 9 : index
    %10 = memref.load %arg1[%c9] : memref<11xf32, #tpu.memory_space<smem>>
    %c10 = arith.constant 10 : index
    %11 = memref.load %arg1[%c10] : memref<11xf32, #tpu.memory_space<smem>>
    %12 = arith.mulf %9, %7 : f32
    %13 = arith.mulf %10, %7 : f32
    %14 = arith.addf %12, %13 : f32
    %15 = arith.addf %9, %10 : f32
    %16 = arith.mulf %15, %8 : f32
    %17 = arith.addf %16, %11 : f32
    %18 = arith.subf %1, %0 : vector<1x128xf32>
    %19 = vector.broadcast %3 : f32 to vector<1x128xf32>
    %20 = arith.mulf %19, %18 : vector<1x128xf32>
    %21 = vector.broadcast %4 : f32 to vector<1x128xf32>
    %22 = arith.mulf %21, %18 : vector<1x128xf32>
    %23 = vector.broadcast %2 : f32 to vector<1x128xf32>
    %24 = arith.mulf %23, %0 : vector<1x128xf32>
    %25 = vector.broadcast %5 : f32 to vector<1x128xf32>
    %26 = arith.addf %24, %25 : vector<1x128xf32>
    %27 = vector.broadcast %2 : f32 to vector<1x128xf32>
    %28 = arith.mulf %27, %1 : vector<1x128xf32>
    %29 = vector.broadcast %5 : f32 to vector<1x128xf32>
    %30 = arith.addf %28, %29 : vector<1x128xf32>
    %31 = vector.broadcast %4 : f32 to vector<1x128xf32>
    %32 = arith.mulf %31, %0 : vector<1x128xf32>
    %33 = vector.broadcast %6 : f32 to vector<1x128xf32>
    %34 = arith.addf %32, %33 : vector<1x128xf32>
    %35 = arith.mulf %26, %20 : vector<1x128xf32>
    %36 = arith.negf %35 : vector<1x128xf32>
    %37 = math.exp %36 : vector<1x128xf32>
    %cst = arith.constant 1.000000e+00 : f32
    %38 = vector.broadcast %cst : f32 to vector<1x128xf32>
    %39 = arith.addf %38, %37 : vector<1x128xf32>
    %40 = arith.divf %38, %39 : vector<1x128xf32>
    %41 = arith.mulf %30, %20 : vector<1x128xf32>
    %42 = arith.negf %41 : vector<1x128xf32>
    %43 = math.exp %42 : vector<1x128xf32>
    %cst_4 = arith.constant 1.000000e+00 : f32
    %44 = vector.broadcast %cst_4 : f32 to vector<1x128xf32>
    %45 = arith.addf %44, %43 : vector<1x128xf32>
    %46 = arith.divf %44, %45 : vector<1x128xf32>
    %47 = vector.broadcast %14 : f32 to vector<1x128xf32>
    %48 = arith.mulf %47, %34 : vector<1x128xf32>
    %49 = vector.broadcast %12 : f32 to vector<1x128xf32>
    %50 = arith.mulf %49, %40 : vector<1x128xf32>
    %51 = vector.broadcast %13 : f32 to vector<1x128xf32>
    %52 = arith.mulf %51, %46 : vector<1x128xf32>
    %53 = arith.addf %50, %52 : vector<1x128xf32>
    %54 = arith.mulf %53, %22 : vector<1x128xf32>
    %55 = arith.addf %48, %54 : vector<1x128xf32>
    %56 = vector.broadcast %17 : f32 to vector<1x128xf32>
    %57 = arith.addf %55, %56 : vector<1x128xf32>
    %58 = arith.negf %57 : vector<1x128xf32>
    %59 = math.exp %58 : vector<1x128xf32>
    %cst_5 = arith.constant 1.000000e+00 : f32
    %60 = vector.broadcast %cst_5 : f32 to vector<1x128xf32>
    %61 = arith.addf %60, %59 : vector<1x128xf32>
    %62 = arith.divf %60, %61 : vector<1x128xf32>
    %c0_6 = arith.constant 0 : index
    %c0_7 = arith.constant 0 : index
    %63 = vector.load %arg4[%c0_6, %c0_7] : memref<1x128xf32, #tpu.memory_space<vmem>>, vector<1x128xf32>
    tpu.vector_store %arg4[%c0_6, %c0_7], %62 {strides = array<i32>} : memref<1x128xf32, #tpu.memory_space<vmem>>, vector<1x128xf32>,
    %c0_8 = arith.constant 0 : index
    %c0_9 = arith.constant 0 : index
    %c0_10 = arith.constant 0 : index
    %64 = vector.load %arg5[%c0_8, %c0_9, %c0_10] : memref<2x1x128xf32, #tpu.memory_space<vmem>>, vector<1x1x128xf32>
    %65 = vector.shape_cast %64 : vector<1x1x128xf32> to vector<1x128xf32>
    %66 = vector.shape_cast %40 : vector<1x128xf32> to vector<1x1x128xf32>
    tpu.vector_store %arg5[%c0_8, %c0_9, %c0_10], %66 {strides = array<i32>} : memref<2x1x128xf32, #tpu.memory_space<vmem>>, vector<1x1x128xf32>,
    %c1_11 = arith.constant 1 : index
    %c0_12 = arith.constant 0 : index
    %c0_13 = arith.constant 0 : index
    %67 = vector.load %arg5[%c1_11, %c0_12, %c0_13] : memref<2x1x128xf32, #tpu.memory_space<vmem>>, vector<1x1x128xf32>
    %68 = vector.shape_cast %67 : vector<1x1x128xf32> to vector<1x128xf32>
    %69 = vector.shape_cast %46 : vector<1x128xf32> to vector<1x1x128xf32>
    tpu.vector_store %arg5[%c1_11, %c0_12, %c0_13], %69 {strides = array<i32>} : memref<2x1x128xf32, #tpu.memory_space<vmem>>, vector<1x1x128xf32>,
    return
  }
  func.func @transform_0(%arg0: i32, %arg1: memref<11xf32, #tpu.memory_space<smem>>) -> (i32, i32) {
    %c0_i32 = arith.constant 0 : i32
    %c0_i32_0 = arith.constant 0 : i32
    return %arg0, %c0_i32 : i32, i32
  }
  func.func @transform_1(%arg0: i32, %arg1: memref<11xf32, #tpu.memory_space<smem>>) -> (i32, i32) {
    %c0_i32 = arith.constant 0 : i32
    %c0_i32_0 = arith.constant 0 : i32
    return %arg0, %c0_i32 : i32, i32
  }
  func.func @transform_2(%arg0: i32, %arg1: memref<11xf32, #tpu.memory_space<smem>>) -> (i32, i32) {
    %c0_i32 = arith.constant 0 : i32
    %c0_i32_0 = arith.constant 0 : i32
    return %arg0, %c0_i32 : i32, i32
  }
  func.func @transform_3(%arg0: i32, %arg1: memref<11xf32, #tpu.memory_space<smem>>) -> (i32, i32, i32) {
    %c0_i32 = arith.constant 0 : i32
    %c0_i32_0 = arith.constant 0 : i32
    %c0_i32_1 = arith.constant 0 : i32
    return %c0_i32, %arg0, %c0_i32_0 : i32, i32, i32
  }
}

</mosaic_0001>

<bundles_post_ra>
// kernel: tpu_custom_call.1
= control target key start
LH: loop header
LB: loop body
LE: loop exit
PB: predicated region body
PF: predicated region fallthrough
CT: control target
= control target key end

     0   :  { %s301_s18 = smov [#allocation3]   ;;  %s391_s0 = inlined_call_operand.hbm [shape: f32[11], index: 0, kind: input, shape index: {}]   ;;  %s392_s1 = inlined_call_operand.hbm [shape: f32[1,128], index: 1, kind: input, shape index: {}]   ;;  %s393_s2 = inlined_call_operand.vmem [shape: f32[1,128], index: 2, kind: input, shape index: {}]   ;;  %s394_s3 = inlined_call_operand.hbm [shape: f32[1,128], index: 3, kind: output, shape index: {0}]   ;;  %s395_s4 = inlined_call_operand.hbm [shape: f32[2,1,128], index: 4, kind: output, shape index: {1}]  }
   0x1   :  { %s11_s17 = sshll.u32 %s391_s0, 4  ;;  %s12_s17 = int_to_ptr.hbm [resolvable:$true] %s11_s17 }
   0x2   :  { %14 = dma.hbm_to_smem %s12_s17, 16, %s301_s18, [#allocation2] }
   0x3   :  { %293 = dma.done.wait [#allocation2], 16 }
   0x4   :  { %294 = vsyncadd [#allocation2], 4294967280 }
   0x5   :  { %17 = sfence }
   0x6   :  { %18 = vsyncpa [#allocation5], 0 }
   0x7   :  { %19 = vsyncpa [#allocation6], 0 }
   0x8   :  { %20 = vsyncpa [#allocation9], 0  ;;  %s26_s21 = sshll.u32 %s392_s1, 4  ;;  %s302_s22 = smov [#allocation4]   ;;  %s27_s21 = int_to_ptr.hbm [resolvable:$true] %s26_s21 }
   0x9   :  { %s28_s23 = sshll.u32 %s302_s22, 4  ;;  %s29_s23 = int_to_ptr.vmem [resolvable:$true] %s28_s23 }
   0xa   :  { %31 = dma.hbm_to_vmem [thread:$0]  %s27_s21, 16, %s29_s23, [#allocation5]  }
   0xb   :  { %295 = dma.done.wait [#allocation5], 16  }
   0xc   :  { %296 = vsyncadd [#allocation5], 4294967280  ;;  %s40_s0 = sld [smem:[#allocation3]]  ;;  %v38_v0 = vld [vmem:[#allocation4] sm:$0x1]  ;;  %s303_s10 = smov [#allocation8]  }
   0xd   :  { %s179_s24 = sld [smem:[#allocation3 + $0x1]]  ;;  %v39_v1 = vld [vmem:[%s393_s2] sm:$0x1]  ;;  %s370_s11 = sshll.u32 %s303_s10, 4  ;;  %s160_s11 = int_to_ptr.vmem [resolvable:$true] %s370_s11 }
   0xe   :  { %s181_s25 = sld [smem:[#allocation3 + $0x3]]  ;;  %v341_v3 = vsub.f32 %v39_v1, %v38_v0  ;;  %s161_s14 = sshll.u32 %s395_s4, 4  ;;  %s162_s14 = int_to_ptr.hbm [resolvable:$true] %s161_s14 }
   0xf   :  { %s344_s1 = sld [smem:[#allocation3 + $0x2]]  ;;  %s304_s17 = smov 16  }
  0x10   :  { %s183_s2 = sld [smem:[#allocation3 + $0x6]]  ;;  %s305_s18 = smov 1  }
  0x11   :  { %s346_s28 = sld [smem:[#allocation3 + $0x8]]  ;;  %s306_s19 = smov [#allocation7]  }
  0x12   :  { %v61_v2 = vstv %s40_s0  ;;  %s348_s29 = sld [smem:[#allocation3 + $0x9]]  ;;  %s149_s20 = sshll.u32 %s306_s19, 4  ;;  %s150_s20 = int_to_ptr.vmem [resolvable:$true] %s149_s20 }
  0x13   :  { %v57_v4 = vstv %s179_s24  ;;  %v62_v5 = vmul.f32 %v61_v2, %v38_v0  ;;  %v65_v6 = vmul.f32 %v61_v2, %v39_v1  ;;  %s350_s30 = sld [smem:[#allocation3 + $0x5]]  ;;  %s151_s23 = sshll.u32 %s394_s3, 4  ;;  %s152_s23 = int_to_ptr.hbm [resolvable:$true] %s151_s23 }
  0x14   :  { %v58_v7 = vmul.f32 %v57_v4, %v341_v3  ;;  %v63_v8 = vstv %s181_s25  ;;  %s352_s5 = sld [smem:[#allocation3 + $0x7]] }
  0x15   :  { %v64_v9 = vadd.f32 %v63_v8, %v62_v5  ;;  %v66_v10 = vadd.f32 %v65_v6, %v63_v8  ;;  %v59_v22 = vstv %s344_s1  ;;  %s355_s6 = sld [smem:[#allocation3 + $0xa]] }
  0x16   :  { %v67_v31 = vmul.f32 %v59_v22, %v38_v0  ;;  %v60_v48 = vmul.f32 %v59_v22, %v341_v3 }
  0x17   :  { %v70_v11 = vmul.f32 %v64_v9, %v58_v7  ;;  %v90_v12 = vmul.f32 %v66_v10, %v58_v7  ;;  %s358_s7 = smul.f32 %s346_s28, %s183_s2 }
  0x18   :  { %s53_s8 = sadd.f32 %s348_s29, %s346_s28  ;;  %s363_s9 = smul.f32 %s348_s29, %s183_s2 }
  0x19   :  { %v188_v13 = vmul.f32 -1.442695, %v70_v11  ;;  %v189_v14 = vmul.f32 -1.442695, %v90_v12  ;;  %v68_v35 = vstv %s350_s30  ;;  %v112_v39 = vstv %s358_s7 }
  0x1a   :  { %s52_s15 = sadd.f32 %s363_s9, %s358_s7  ;;  %s54_s16 = smul.f32 %s352_s5, %s53_s8  ;;  %v114_v41 = vstv %s363_s9  ;;  %v69_v42 = vadd.f32 %v68_v35, %v67_v31 }
  0x1b   :  { %197 = vpow2.f32 %v188_v13 }
  0x1c   :  { %199 = vpow2.f32 %v189_v14  ;;  %v110_v46 = vstv %s52_s15  ;;  %s55_s4 = sadd.f32 %s355_s6, %s54_s16 }
  0x1d   :  { %v111_v50 = vmul.f32 %v110_v46, %v69_v42 }
  0x1e   :  { %v119_v53 = vstv %s55_s4 }
  0x21   :  { %v198_v15 = vpop.eup %197 }
  0x22   :  { %v200_v16 = vpop.eup %199  ;;  %v74_v17 = vadd.f32 1.0, %v198_v15 }
  0x23   :  { %v94_v18 = vadd.f32 1.0, %v200_v16 }
  0x24   :  { %201 = vrcp.f32 %v74_v17  ;;  %vm80_vm0 = vweird.f32 %v74_v17  ;;  %v86_v23 = vand.u32 2147483648, %v74_v17  ;;  %v84_v26 = vand.u32 2147483647, %v74_v17 }
  0x25   :  { %203 = vrcp.f32 %v94_v18  ;;  %v106_v27 = vand.u32 2147483648, %v94_v18  ;;  %vm100_vm2 = vweird.f32 %v94_v18  ;;  %v104_v29 = vand.u32 2147483647, %v94_v18 }
  0x26   :  { %v87_v33 = vor.u32 1.1754944e-38, %v86_v23  ;;  %vm85_vm5 = vcmp.eq.f32.partialorder %v84_v26, 8.507059e+37 }
  0x27   :  { %v107_v37 = vor.u32 1.1754944e-38, %v106_v27  ;;  %vm105_vm7 = vcmp.eq.f32.partialorder %v104_v29, 8.507059e+37 }
  0x2a   :  { %v202_v19 = vpop.eup %201 }
  0x2b   :  { %v204_v20 = vpop.eup %203  ;;  %v76_v21 = vmul.f32 %v202_v19, %v74_v17  ;;  %vm81_vm1 = vweird.f32 %v202_v19 }
  0x2c   :  { %v96_v24 = vmul.f32 %v204_v20, %v94_v18  ;;  %vm101_vm3 = vweird.f32 %v204_v20  ;;  %vm366_vm4 = vmor %vm80_vm0, %vm81_vm1 }
  0x2d   :  { %v77_v25 = vsub.f32 1.0, %v76_v21  ;;  %vm102_vm6 = vmor %vm100_vm2, %vm101_vm3 }
  0x2e   :  { %v97_v28 = vsub.f32 1.0, %v96_v24 }
  0x2f   :  { %v78_v30 = vmul.f32 %v202_v19, %v77_v25 }
  0x30   :  { %v98_v34 = vmul.f32 %v204_v20, %v97_v28 }
  0x31   :  { %v79_v36 = vadd.f32 %v202_v19, %v78_v30 }
  0x32   :  { %v99_v38 = vadd.f32 %v204_v20, %v98_v34 }
  0x33   :  { %v83_v40 = vsel %vm366_vm4, %v202_v19, %v79_v36 }
  0x34   :  { %v88_v43 = vsel %vm85_vm5, %v87_v33, %v83_v40  ;;  %v103_v44 = vsel %vm102_vm6, %v204_v20, %v99_v38 }
  0x35   :  { %v108_v45 = vsel %vm105_vm7, %v107_v37, %v103_v44  ;;  %v113_v47 = vmul.f32 %v112_v39, %v88_v43  ;;  %141 = vst [vmem:[#allocation8] sm:$0x1] %v88_v43 }
  0x36   :  { %v115_v49 = vmul.f32 %v114_v41, %v108_v45  ;;  %143 = vst [vmem:[#allocation8 + $0x1] sm:$0x1] %v108_v45 }
  0x37   :  { %167 = dma.vmem_to_hbm [thread:$0]  %s160_s11, 32, %s162_s14, [#allocation9], %s304_s17, %s304_s17, %s305_s18  }
  0x38   :  { %v116_v51 = vadd.f32 %v115_v49, %v113_v47 }
  0x3a   :  { %v117_v52 = vmul.f32 %v116_v51, %v60_v48 }
  0x3c   :  { %v118_v54 = vadd.f32 %v117_v52, %v111_v50 }
  0x3e   :  { %v120_v55 = vadd.f32 %v119_v53, %v118_v54 }
  0x40   :  { %v190_v56 = vmul.f32 -1.442695, %v120_v55 }
  0x42   :  { %205 = vpow2.f32 %v190_v56 }
  0x48   :  { %v206_v57 = vpop.eup %205 }
  0x49   :  { %v124_v58 = vadd.f32 1.0, %v206_v57 }
  0x4b   :  { %207 = vrcp.f32 %v124_v58  ;;  %v136_v61 = vand.u32 2147483648, %v124_v58  ;;  %vm130_vm8 = vweird.f32 %v124_v58  ;;  %v134_v63 = vand.u32 2147483647, %v124_v58 }
  0x4d   :  { %v137_v1 = vor.u32 1.1754944e-38, %v136_v61  ;;  %vm135_vm11 = vcmp.eq.f32.partialorder %v134_v63, 8.507059e+37 }
  0x51   :  { %v208_v59 = vpop.eup %207 }
  0x52   :  { %v126_v60 = vmul.f32 %v208_v59, %v124_v58  ;;  %vm131_vm9 = vweird.f32 %v208_v59 }
  0x53   :  { %vm132_vm10 = vmor %vm130_vm8, %vm131_vm9 }
  0x54   :  { %v127_v62 = vsub.f32 1.0, %v126_v60 }
  0x56   :  { %v128_v0 = vmul.f32 %v208_v59, %v127_v62 }
  0x58   :  { %v129_v2 = vadd.f32 %v208_v59, %v128_v0 }
  0x5a   :  { %v133_v3 = vsel %vm132_vm10, %v208_v59, %v129_v2 }
  0x5b   :  { %v138_v4 = vsel %vm135_vm11, %v137_v1, %v133_v3 }
  0x5c   :  { %140 = vst [vmem:[#allocation7] sm:$0x1] %v138_v4 }
  0x5d   :  { %154 = dma.vmem_to_hbm [thread:$0]  %s150_s20, 16, %s152_s23, [#allocation6]  }
  0x5e   :  { %297 = dma.done.wait [#allocation6], 16  }
  0x5f   :  { %298 = vsyncadd [#allocation6], 4294967280 }
  0x60   :  { %299 = dma.done.wait [#allocation9], 32  }
  0x61   :  { %300 = vsyncadd [#allocation9], 4294967264 }
  0x62   :  { %176 = vsyncpa [#allocation5], 1 }
  0x63   :  { %177 = vsyncpa [#allocation6], 1 }
  0x64   :  { %178 = vsyncpa [#allocation9], 1 }

</bundles_post_ra>
